<compile_context>
chip_gen: v6e
topology: v6e:2x2x1
jax: 0.10.0
libtpu: 0.0.40
codegen_flags: <defaults>
</compile_context>

<pallas_src>
import functools
import math

import numpy as np
import jax
import jax.numpy as jnp
from jax.experimental import pallas as pl
from jax.experimental.pallas import tpu as pltpu


def _softmax_last(s):
    # softmax over the last (lane) axis.
    m = jnp.max(s, axis=-1, keepdims=True)
    e = jnp.exp(s - m)
    return e / jnp.sum(e, axis=-1, keepdims=True)


def _spatial_att_kernel(x_ref, vst_ref, bst_ref, k_ref, o_ref, *, bb, N, T):
    # x_ref: (bb, N, C*T) ; vst/bst: (N, N) == Vs^T / bs^T ; k: (C*T, 2T)
    # o_ref: (bb, 1, N*N)  (stores P2[b, m, n] == S_final[b, n, m])
    ct = x_ref.shape[-1]
    x = x_ref[...].reshape(bb * N, ct)

    # One MXU matmul gives both contractions:
    #   p[:, :T] = (X @ W1) @ W2 ,  p[:, T:] = W3 @ X
    p = jnp.dot(x, k_ref[...], preferred_element_type=jnp.float32)   # (bb*N, 2T)
    p = p.reshape(bb, N, 2 * T)
    w1xw2 = p[:, :, :T]                                              # (bb, N, T)
    w3x = p[:, :, T:]                                                # (bb, N, T)

    # Transposed orientation: P[b, m, n] = S[b, n, m].  softmax(dim=1) of S is
    # then a lane-axis softmax of P.
    s = jnp.einsum("bmt,bnt->bmn", w3x, w1xw2,
                   preferred_element_type=jnp.float32)               # (bb, N, N)
    s = s + bst_ref[...][None]                                       # bst = bs^T
    s = _softmax_last(s)

    # Vs @ S in transposed space: P2[b,m,:] = P[b,m,:] @ Vs^T -- one flattened
    # MXU matmul for the whole batch tile (weights pushed once).
    s = jnp.dot(s.reshape(bb * N, N), vst_ref[...],
                preferred_element_type=jnp.float32).reshape(bb, N, N)
    s = _softmax_last(s)

    # Lane-dense store: (bb, 1, N*N) slab (N*N multiple of 128 for N >= 16).
    o_ref[...] = s.reshape(bb, 1, N * N).astype(o_ref.dtype)


def _pick_batch_tile(B, max_bb=8):
    # Largest divisor of B that is <= max_bb while keeping >= 2 grid steps
    # (so the "parallel" axis can still shard across v7x's two TensorCores).
    best = 1
    for d in range(1, max_bb + 1):
        if d <= B and B % d == 0 and (B // d >= 2 or B == 1):
            best = d
    return best


def spatial_att(x, vs, bs, w1, w2, w3, *, bb=None):
    B, N, C, T = x.shape
    if bb is None:
        bb = _pick_batch_tile(B)
    assert B % bb == 0

    # Lane-dense input layout: (B, N, C*T).
    xf = x.reshape(B, N, C * T).astype(jnp.float32)

    # Fused weight K = [K1 | K3], shape (C*T, 2T):
    #   K1[c*T + t1, t] = W1[t1] * W2[c, t]   -> X_flat @ K1 == (X @ W1) @ W2
    #   K3[c*T + t1, t] = W3[c]  * (t1 == t)  -> X_flat @ K3 == W3 @ X
    w1f = w1.astype(jnp.float32)
    w2f = w2.astype(jnp.float32)
    w3f = w3.astype(jnp.float32)
    k1 = (w1f[None, :, None] * w2f[:, None, :]).reshape(C * T, T)
    k3 = (w3f[:, None, None] * jnp.eye(T, dtype=jnp.float32)[None]).reshape(C * T, T)
    k = jnp.concatenate([k1, k3], axis=1)                            # (C*T, 2T)

    kernel = functools.partial(_spatial_att_kernel, bb=bb, N=N, T=T)

    out = pl.pallas_call(
        kernel,
        out_shape=jax.ShapeDtypeStruct((B, 1, N * N), jnp.float32),
        grid_spec=pltpu.PrefetchScalarGridSpec(
            num_scalar_prefetch=0,
            grid=(B // bb,),
            in_specs=[
                pl.BlockSpec((bb, N, C * T), lambda i: (i, 0, 0)),
                pl.BlockSpec((N, N), lambda i: (0, 0)),
                pl.BlockSpec((N, N), lambda i: (0, 0)),
                pl.BlockSpec((C * T, 2 * T), lambda i: (0, 0)),
            ],
            out_specs=pl.BlockSpec((bb, 1, N * N), lambda i: (i, 0, 0)),
        ),
        compiler_params=pltpu.CompilerParams(
            dimension_semantics=("parallel",),
        ),
    )(xf, vs.T.astype(jnp.float32), bs.T.astype(jnp.float32), k)

    # Kernel stores P2[b, m, n] == S_final[b, n, m]; undo the orientation with
    # a tiny XLA transpose outside the kernel.
    return out.reshape(B, N, N).transpose(0, 2, 1)


def _linear_relu_fusion_kernel(y_ref, w_ref, b_ref, f_ref, o_ref):
    # y: (B*N, C) ; w: (C, Tp) ; b, f: (1, Tp) ; o: (B*N, Tp)
    h = jnp.dot(y_ref[...], w_ref[...], preferred_element_type=jnp.float32)
    h = jnp.maximum(h + b_ref[...], 0.0)
    o_ref[...] = (2.0 * f_ref[...] * h).astype(o_ref.dtype)


def linear_relu_fusion(yd, yw, w_lin, b_lin, w_fuse):
    """LinearD -> ReLU -> Fusion2 head of ASTGCN_noRecent.

    Fusion2.forward ignores its first argument (returns W1*Y2 + W1*Y2), so the
    daily branch `yd` does not affect the output; it is accepted only to
    mirror the module signature.
    """
    del yd
    B, N, _, C = yw.shape
    Tp = w_lin.shape[0]
    ywf = yw.reshape(B * N, C).astype(jnp.float32)
    out = pl.pallas_call(
        _linear_relu_fusion_kernel,
        out_shape=jax.ShapeDtypeStruct((B * N, Tp), jnp.float32),
        grid_spec=pltpu.PrefetchScalarGridSpec(
            num_scalar_prefetch=0,
            grid=(1,),
            in_specs=[
                pl.BlockSpec((B * N, C), lambda i: (0, 0)),
                pl.BlockSpec((C, Tp), lambda i: (0, 0)),
                pl.BlockSpec((1, Tp), lambda i: (0, 0)),
                pl.BlockSpec((1, Tp), lambda i: (0, 0)),
            ],
            out_specs=pl.BlockSpec((B * N, Tp), lambda i: (0, 0)),
        ),
    )(ywf, w_lin.T.astype(jnp.float32),
      b_lin.reshape(1, Tp).astype(jnp.float32),
      w_fuse.reshape(1, Tp).astype(jnp.float32))
    return out.reshape(B, N, 1, Tp)


# ---------------- pure-JAX references (PyTorch semantics) ----------------

def spatial_att_ref(x, vs, bs, w1, w2, w3):
    w1x = jnp.einsum("bnct,t->bnc", x, w1)
    w3x = jnp.einsum("c,bnct->bnt", w3, x)
    s = jnp.einsum("bnt,bmt->bnm", jnp.einsum("bnc,ct->bnt", w1x, w2), w3x)
    s = s + bs[None]
    s = jax.nn.softmax(s, axis=1)
    s = jnp.einsum("nm,bmk->bnk", vs, s)
    return jax.nn.softmax(s, axis=1)


def linear_relu_fusion_ref(yd, yw, w_lin, b_lin, w_fuse):
    del yd
    h = jnp.maximum(jnp.einsum("bnoc,tc->bnot", yw, w_lin) + b_lin, 0.0)
    return w_fuse * h + w_fuse * h


def _xavier_uniform(key, shape):
    fan_in, fan_out = shape[-1], shape[-2]
    bound = math.sqrt(6.0 / (fan_in + fan_out))
    return jax.random.uniform(key, shape, jnp.float32, -bound, bound)


if __name__ == "__main__":
    key = jax.random.PRNGKey(0)

    # SpatialAtt core: small config (B=2) plus a larger batch (B=8) that
    # exercises the bb > 1 batch-stacking path.
    for (B, N, C, T) in [(2, 16, 4, 8), (8, 16, 4, 8)]:
        key, kx, kvs, kbs, kw1, kw2, kw3 = jax.random.split(key, 7)
        x = jax.random.normal(kx, (B, N, C, T), jnp.float32)
        vs = _xavier_uniform(kvs, (N, N))
        bs = _xavier_uniform(kbs, (N, N))
        w1 = jax.random.uniform(kw1, (T,), jnp.float32)   # nn.init.uniform_ -> U(0,1)
        w2 = _xavier_uniform(kw2, (C, T))
        w3 = jax.random.uniform(kw3, (C,), jnp.float32)

        out = jax.block_until_ready(spatial_att(x, vs, bs, w1, w2, w3))
        ref = jax.block_until_ready(spatial_att_ref(x, vs, bs, w1, w2, w3))
        np.testing.assert_allclose(np.asarray(out), np.asarray(ref),
                                   rtol=1e-5, atol=1e-5)

    # Output head: LinearD(32 -> Tp) + ReLU + Fusion2 on the STBlock branch
    # outputs (B, N, 1, 32).
    B, N, C2, Tp = 2, 16, 32, 8
    key, kyd, kyw, kwl, kbl, kwf = jax.random.split(key, 6)
    yd = jax.random.normal(kyd, (B, N, 1, C2), jnp.float32)
    yw = jax.random.normal(kyw, (B, N, 1, C2), jnp.float32)
    w_lin = _xavier_uniform(kwl, (Tp, C2))                # torch Linear (out, in)
    bound = 1.0 / math.sqrt(C2)
    b_lin = jax.random.uniform(kbl, (Tp,), jnp.float32, -bound, bound)
    w_fuse = jax.random.uniform(kwf, (Tp,), jnp.float32)  # Fusion2.W1 ~ U(0,1)

    out = jax.block_until_ready(linear_relu_fusion(yd, yw, w_lin, b_lin, w_fuse))
    ref = jax.block_until_ready(linear_relu_fusion_ref(yd, yw, w_lin, b_lin, w_fuse))
    np.testing.assert_allclose(np.asarray(out), np.asarray(ref),
                               rtol=1e-5, atol=1e-5)

    print("KERNEL_OK")
</pallas_src>

<mosaic_0001>
module attributes {stable_mosaic.version = 11 : i64} {
  func.func @_spatial_att_kernel(%arg0: i32, %arg1: memref<1x16x32xf32, #tpu.memory_space<vmem>>, %arg2: memref<16x16xf32, #tpu.memory_space<vmem>>, %arg3: memref<16x16xf32, #tpu.memory_space<vmem>>, %arg4: memref<32x16xf32, #tpu.memory_space<vmem>>, %arg5: memref<1x1x256xf32, #tpu.memory_space<vmem>>) attributes {dimension_semantics = [#tpu.dimension_semantics<parallel>], iteration_bounds = array<i64: 2>, scalar_prefetch = 0 : i64, scratch_operands = 0 : i64, tpu.core_type = #tpu.core_type<tc>, window_params = [{transform_indices = @transform_0, window_bounds = array<i64: 1, 16, 32>}, {pipeline_mode = #tpu.pipeline_mode<synchronous>, transform_indices = @transform_1, window_bounds = array<i64: 16, 16>}, {pipeline_mode = #tpu.pipeline_mode<synchronous>, transform_indices = @transform_2, window_bounds = array<i64: 16, 16>}, {pipeline_mode = #tpu.pipeline_mode<synchronous>, transform_indices = @transform_3, window_bounds = array<i64: 32, 16>}, {transform_indices = @transform_4, window_bounds = array<i64: 1, 1, 256>}]} {
    %c0 = arith.constant 0 : index
    %c0_0 = arith.constant 0 : index
    %c0_1 = arith.constant 0 : index
    %0 = vector.load %arg1[%c0, %c0_0, %c0_1] : memref<1x16x32xf32, #tpu.memory_space<vmem>>, vector<1x16x32xf32>
    %1 = vector.shape_cast %0 : vector<1x16x32xf32> to vector<16x32xf32>
    %c0_2 = arith.constant 0 : index
    %c0_3 = arith.constant 0 : index
    %2 = vector.load %arg4[%c0_2, %c0_3] : memref<32x16xf32, #tpu.memory_space<vmem>>, vector<32x16xf32>
    %cst = arith.constant dense<0.000000e+00> : vector<16x16xf32>
    %3 = tpu.matmul %1, %2, %cst {dimension_numbers = #tpu.dot_dimension_numbers<[1], [0], [0], [1], [0, 0, 1, 1], [], []>} : vector<16x32xf32>, vector<32x16xf32>, vector<16x16xf32> -> vector<16x16xf32>
    %4 = vector.shape_cast %3 : vector<16x16xf32> to vector<1x16x16xf32>
    %5 = vector.extract_strided_slice %4 {offsets = [0, 0, 0], sizes = [1, 16, 8], strides = [1, 1, 1]} : vector<1x16x16xf32> to vector<1x16x8xf32>
    %6 = vector.extract_strided_slice %4 {offsets = [0, 0, 8], sizes = [1, 16, 8], strides = [1, 1, 1]} : vector<1x16x16xf32> to vector<1x16x8xf32>
    "tpu.trace_start"() <{level = 10 : i32, message = "bmt,bnt->bmn"}> : () -> ()
    %cst_4 = arith.constant dense<0.000000e+00> : vector<1x16x16xf32>
    %7 = tpu.matmul %6, %5, %cst_4 {dimension_numbers = #tpu.dot_dimension_numbers<[2], [2], [1], [1], [0, 0, 0, 1, 1, 1], [0], [0]>} : vector<1x16x8xf32>, vector<1x16x8xf32>, vector<1x16x16xf32> -> vector<1x16x16xf32>
    "tpu.trace_stop"() : () -> ()
    %c0_5 = arith.constant 0 : index
    %c0_6 = arith.constant 0 : index
    %8 = vector.load %arg3[%c0_5, %c0_6] : memref<16x16xf32, #tpu.memory_space<vmem>>, vector<16x16xf32>
    %9 = vector.shape_cast %8 : vector<16x16xf32> to vector<1x16x16xf32>
    %10 = arith.addf %7, %9 : vector<1x16x16xf32>
    %cst_7 = arith.constant dense<0xFF800000> : vector<1x16xf32>
    %11 = vector.multi_reduction <maximumf>, %10, %cst_7 [2] : vector<1x16x16xf32> to vector<1x16xf32>
    %12 = vector.shape_cast %11 : vector<1x16xf32> to vector<1x16x1xf32>
    %13 = vector.broadcast %12 : vector<1x16x1xf32> to vector<1x16x16xf32>
    %14 = arith.subf %10, %13 : vector<1x16x16xf32>
    %15 = math.exp %14 : vector<1x16x16xf32>
    %cst_8 = arith.constant dense<0.000000e+00> : vector<1x16xf32>
    %16 = vector.multi_reduction <add>, %15, %cst_8 [2] : vector<1x16x16xf32> to vector<1x16xf32>
    %17 = vector.shape_cast %16 : vector<1x16xf32> to vector<1x16x1xf32>
    %18 = vector.broadcast %17 : vector<1x16x1xf32> to vector<1x16x16xf32>
    %19 = arith.divf %15, %18 : vector<1x16x16xf32>
    %20 = vector.shape_cast %19 : vector<1x16x16xf32> to vector<16x16xf32>
    %c0_9 = arith.constant 0 : index
    %c0_10 = arith.constant 0 : index
    %21 = vector.load %arg2[%c0_9, %c0_10] : memref<16x16xf32, #tpu.memory_space<vmem>>, vector<16x16xf32>
    %cst_11 = arith.constant dense<0.000000e+00> : vector<16x16xf32>
    %22 = tpu.matmul %20, %21, %cst_11 {dimension_numbers = #tpu.dot_dimension_numbers<[1], [0], [0], [1], [0, 0, 1, 1], [], []>} : vector<16x16xf32>, vector<16x16xf32>, vector<16x16xf32> -> vector<16x16xf32>
    %23 = vector.shape_cast %22 : vector<16x16xf32> to vector<1x16x16xf32>
    %cst_12 = arith.constant dense<0xFF800000> : vector<1x16xf32>
    %24 = vector.multi_reduction <maximumf>, %23, %cst_12 [2] : vector<1x16x16xf32> to vector<1x16xf32>
    %25 = vector.shape_cast %24 : vector<1x16xf32> to vector<1x16x1xf32>
    %26 = vector.broadcast %25 : vector<1x16x1xf32> to vector<1x16x16xf32>
    %27 = arith.subf %23, %26 : vector<1x16x16xf32>
    %28 = math.exp %27 : vector<1x16x16xf32>
    %cst_13 = arith.constant dense<0.000000e+00> : vector<1x16xf32>
    %29 = vector.multi_reduction <add>, %28, %cst_13 [2] : vector<1x16x16xf32> to vector<1x16xf32>
    %30 = vector.shape_cast %29 : vector<1x16xf32> to vector<1x16x1xf32>
    %31 = vector.broadcast %30 : vector<1x16x1xf32> to vector<1x16x16xf32>
    %32 = arith.divf %28, %31 : vector<1x16x16xf32>
    %33 = vector.shape_cast %32 : vector<1x16x16xf32> to vector<1x1x256xf32>
    %c0_14 = arith.constant 0 : index
    %c0_15 = arith.constant 0 : index
    %c0_16 = arith.constant 0 : index
    %34 = vector.load %arg5[%c0_14, %c0_15, %c0_16] : memref<1x1x256xf32, #tpu.memory_space<vmem>>, vector<1x1x256xf32>
    tpu.vector_store %arg5[%c0_14, %c0_15, %c0_16], %33 {strides = array<i32>} : memref<1x1x256xf32, #tpu.memory_space<vmem>>, vector<1x1x256xf32>,
    return
  }
  func.func @transform_0(%arg0: i32) -> (i32, i32, i32) {
    %c0_i32 = arith.constant 0 : i32
    %c0_i32_0 = arith.constant 0 : i32
    %c0_i32_1 = arith.constant 0 : i32
    return %arg0, %c0_i32, %c0_i32_0 : i32, i32, i32
  }
  func.func @transform_1(%arg0: i32) -> (i32, i32) {
    %c0_i32 = arith.constant 0 : i32
    %c0_i32_0 = arith.constant 0 : i32
    %c0_i32_1 = arith.constant 0 : i32
    return %c0_i32, %c0_i32_0 : i32, i32
  }
  func.func @transform_2(%arg0: i32) -> (i32, i32) {
    %c0_i32 = arith.constant 0 : i32
    %c0_i32_0 = arith.constant 0 : i32
    %c0_i32_1 = arith.constant 0 : i32
    return %c0_i32, %c0_i32_0 : i32, i32
  }
  func.func @transform_3(%arg0: i32) -> (i32, i32) {
    %c0_i32 = arith.constant 0 : i32
    %c0_i32_0 = arith.constant 0 : i32
    %c0_i32_1 = arith.constant 0 : i32
    return %c0_i32, %c0_i32_0 : i32, i32
  }
  func.func @transform_4(%arg0: i32) -> (i32, i32, i32) {
    %c0_i32 = arith.constant 0 : i32
    %c0_i32_0 = arith.constant 0 : i32
    %c0_i32_1 = arith.constant 0 : i32
    return %arg0, %c0_i32, %c0_i32_0 : i32, i32, i32
  }
}

</mosaic_0001>

<bundles_post_ra>
// kernel: tpu_custom_call.1
= control target key start
LH: loop header
LB: loop body
LE: loop exit
PB: predicated region body
PF: predicated region fallthrough
CT: control target
= control target key end

     0   :  { %9 = vsyncpa [#allocation3], 0  ;;  %s1227_s0 = inlined_call_operand.vmem [shape: f32[2,16,32], index: 0, kind: input, shape index: {}]   ;;  %s1228_s1 = inlined_call_operand.vmem [shape: f32[16,16], index: 1, kind: input, shape index: {}]   ;;  %s1229_s2 = inlined_call_operand.hbm [shape: f32[16,16], index: 2, kind: input, shape index: {}]   ;;  %s1230_s3 = inlined_call_operand.vmem [shape: f32[32,16], index: 3, kind: input, shape index: {}]   ;;  %s1231_s4 = inlined_call_operand.hbm [shape: f32[2,1,256], index: 4, kind: output, shape index: {}]  }
   0x1   :  { %10 = vsyncpa [#allocation4], 0 }
   0x2   :  { %12 = vsyncpa [#allocation4 + $0x1], 0  ;;  %s1077_s15 = smov 0   ;;  %s1079_s16 = smov 0  }
   0x3   :  { %s1081_s17 = smov 0   ;;  %s1083_s18 = smov 0  }
   0x4 LB: > { %s1098_s19 = sadd.s32 4294967295, %s1034_s18   ;;  %s801_s20 = sadd.s32 4294967294, %s1034_s18   ;;  %s1034_s18 = sphi %s1083_s18, %s1239_s18   ;;  %s1030_s17 = sphi %s1081_s17, %s1238_s17   ;;  %s1026_s16 = sphi %s1079_s16, %s1237_s16   ;;  %s1022_s15 = sphi %s1077_s15, %s1236_s15  }
   0x5   : > { %s1102_s21 = sadd.s32 1, %s1034_s18   ;;  %s114_s22 = sadd.s32 1, %s1030_s17 }
   0x6   : > { %s111_s23 = ssub.s32 %s1034_s18, %s1102_s21  ;;  %p124_p0 = scmp.ne.s32.totalorder %s1030_s17, %s1026_s16 }
   0x7   : > { %p112_p1 = scmp.eq.s32.totalorder %s111_s23, 0  ;;  %p125_p2 = scmp.eq.s32.totalorder %s1098_s19, 1 }
   0x8   : > { %p130_p3 = scmp.ne.s32.totalorder %s1026_s16, %s1022_s15  ;;  %p131_p4 = scmp.eq.s32.totalorder %s801_s20, 1 }
   0x9   : > { %s1113_s24 = scalar_select %p112_p1, %s1030_s17, %s114_s22  }
   0xa   : > { %p1115_p5 = por %p125_p2, %p124_p0  ;;  %p1119_p6 = por %p131_p4, %p130_p3 }
   0xb   : > { %p802_p7 = scmp.ge.s32.totalorder %s1034_s18, 1  ;;  %p138_p8 = scmp.lt.s32.totalorder %s1034_s18, 3 }
   0xc   : > { %s1233_s26 = scalar_select %p1119_p6, 1, 0 }
   0xd   : > { %p878_p9 = scmp.eq.s32.totalorder %s1098_s19, 0  ;;  %p1126_p10 = pnand %p802_p7, %p138_p8 }
   0xe   : > { %s1036_s28 = smov [#allocation2]  }
   0xf   : > { %s153_s29 = sshll.u32 %s1036_s28, 4  ;;  %p870_p11 = pneg %p1126_p10  ;;  %s154_s29 = int_to_ptr.vmem [resolvable:$true] %s153_s29 }
  0x10   : > { %s955_s30 = scalar_lea.vmem %s154_s29, 256  ;;  %p963_p3 = scmp.lt.s32.totalorder %s154_s29, %s154_s29 }
  0x11   : > { %p871_p12 = pnand %p878_p9, %p870_p11  ;;  %p956_p0 = scmp.ne.s32.totalorder %s154_s29, %s955_s30 }
  0x12   : > { %p964_p4 = scmp.lt.s32.totalorder %s955_s30, %s955_s30 }
  0x13   : > { %p946_p13 = pneg %p871_p12 }
  0x14   : > { %p965_p6 = por %p964_p4, %p963_p3 }
  0x15   : > { %p958_p1 = pnand %p956_p0, %p946_p13 }
  0x17   : > { %p959_p2 = pneg %p958_p1 }
  0x19   : > { %p966_p7 = pnand %p965_p6, %p959_p2 }
  0x1b   : > { %969 = shalt.err (!%p966_p7)
}
  0x1c   : > { %s1037_s5 = smov 128   ;;  %s1038_s6 = smov 8  }
  0x1d   : > { %873 = dma.hbm_to_vmem [thread:$0]  (!%p871_p12), %s1229_s2, 256, %s154_s29, [#allocation3], %s1037_s5, %s1037_s5, %s1038_s6  }
  0x1e   : > { %180 = sbr.rel (%p1126_p10) target bundleno = 1556 (0x614), region = 36 }
  0x23   : > { %1013 = dma.done.wait (%p878_p9), [#allocation3], 256  }
  0x24   : > { %1015 = vsyncadd (%p878_p9), [#allocation3], 4294967040  ;;  %p206_p8 = scmp.lt.s32.totalorder %s1098_s19, 1  ;;  %vm217_vm0 = vcmask 261120   ;;  %v216_v0 = vld [vmem:[%s1230_s3 + $0x18] sm:$0xff]  ;;  %v215_v1 = vld [vmem:[%s1230_s3 + $0x10] sm:$0xff]  ;;  %v523_v54 = vlaneseq }
  0x25   : > { %839 = vmatprep.subr.mxu0 %v216_v0  ;;  %v214_v3 = vld [vmem:[%s1230_s3 + $0x8] sm:$0xff]  ;;  %v213_v4 = vld [vmem:[%s1230_s3] sm:$0xff]  ;;  %vm307_vm1 = vcmask 64512   ;;  %s1039_s5 = smov 120   ;;  %vm391_vm2 = vcmask 130048   ;;  %s1044_s11 = smov 32  }
  0x26   : > { %s207_s9 = scalar_select %p206_p8, %s1098_s19, 1  ;;  %840 = vmatpush3.msra.mxu0 %v216_v0  ;;  %v299_v11 = vld [vmem:[#allocation2] sm:$0xff]  ;;  %v300_v12 = vld [vmem:[#allocation2 + $0x8] sm:$0xff]  ;;  %v1040_v52 = vmov 1983009808   ;;  %v1179_v59 = vshrl.u32 %v523_v54, 7 }
  0x27   : > { %841 = vmatprep.subr.mxu0 %v215_v1  ;;  %v415_v28 = vld [vmem:[%s1228_s1 + $0x8] sm:$0xff]  ;;  %v414_v29 = vld [vmem:[%s1228_s1] sm:$0xff]  ;;  %v521_v53 = vunpack.c.l.s4 %v1040_v52  ;;  %v1041_v55 = vmov 1934713408   ;;  %s1045_s12 = smov 64   ;;  %s1047_s14 = smov 96  }
  0x28   : > { %s823_s10 = sshll.u32 %s207_s9, 4  ;;  %842 = vmatpush3.msra.mxu0 %v215_v1  ;;  %v536_v56 = vunpack.c.l.s4 %v1041_v55  ;;  %s1048_s20 = smov 112   ;;  %vm675_vm3 = vcmask 392192   ;;  %vm677_vm4 = vcmask 523264   ;;  %vm679_vm5 = vcmask 654336  }
  0x29   : > { %s210_s13 = scalar_lea.vmem %s1227_s0, %s823_s10  ;;  %843 = vmatprep.subr.mxu0 %v214_v3  ;;  %v522_v58 = vunpack.c.0.s8 %v521_v53  ;;  %s1043_s10 = smov 16   ;;  %vm681_vm6 = vcmask 785408   ;;  %vm683_vm7 = vcmask 916480   ;;  %vm712_vm8 = vcmp.lt.s32.totalorder %v523_v54, 256 }
  0x2a   : > { %v211_v2 = vld [vmem:[%s210_s13] sm:$0xff]  ;;  %844 = vmatpush3.msra.mxu0 %v214_v3  ;;  %v212_v5 = vld [vmem:[%s210_s13 + $0x8] sm:$0xff]  ;;  %v537_v60 = vunpack.c.0.s8 %v536_v56  ;;  %v1042_v3 = vmov 0.0   ;;  %s1046_s13 = smov 80   ;;  %s1049_s22 = smov 48  }
  0x2b   : > { %847 = vmatprep.mubr.msk.f32.mxu0 %vm217_vm0, %v211_v2  ;;  %845 = vmatprep.subr.mxu0 %v213_v4  ;;  %v525_v0 = vsub.s32 %v522_v58, %v1179_v59  ;;  %s203_s23 = sand.u32 1, %s1026_s16   ;;  %s824_s28 = sshll.u32 %s1098_s19, 5 }
  0x2c   : > { %846 = vmatpush3.msra.mxu0 %v213_v4  ;;  %v540_v1 = vsub.s32 %v537_v60, %v1179_v59  ;;  %s807_s27 = sshll.u32 %s203_s23, 1  ;;  %s728_s7 = scalar_lea.hbm %s1231_s4, %s824_s28 }
  0x2d   : > { %848 = vmatmul.mubr.msk.f32.vlgmr.msra.gmra.mxu0 %vm217_vm0, %v212_v5  ;;  %857 = vmatprep.subr.mxu0 %v415_v28  ;;  %s205_s29 = scalar_lea.vmem [#allocation5], %s807_s27  ;;  %s716_s8 = scalar_lea.sflag [#allocation4], %s203_s23 }
  0x2e   : > { %858 = vmatpush3.msra.mxu0 %v415_v28  ;;  %s730_s30 = sshll.u32 %s205_s29, 4  ;;  %s1051_s19 = smov [#allocation5]   ;;  %s731_s30 = int_to_ptr.vmem [resolvable:$true] %s730_s30 }
  0x2f   : > { %859 = vmatprep.subr.mxu0 %v414_v29  ;;  %s970_s9 = scalar_lea.vmem %s731_s30, 32 }
  0x30   : > { %860 = vmatpush3.msra.mxu0 %v414_v29  ;;  %p971_p6 = scmp.ne.s32.totalorder %s731_s30, %s970_s9 }
  0x32   : > { %p972_p9 = pnand %p971_p6, %p1115_p5 }
  0x34   : > { %p973_p10 = pneg %p972_p9 }
  0xed   : > { %v849_v6 = vpop.f32.mrf.mxu0 }
  0xee   : > { %850 = vmatprep.subr.msk.mxu1 %vm307_vm1, %v849_v6 }
  0xef   : > { %v290_v7 = vpop.f32.mrf.mxu0  ;;  %851 = vmatpush3.xpose.msk.msra.mxu1 %vm307_vm1, %v849_v6 }
  0xf0   : > { %303 = vrot.lane.b32.xlu0 %v290_v7, %s1039_s5  ;;  %852 = vmatprep.subr.msk.mxu1 %vm307_vm1, %v290_v7 }
  0xf3   : > { %853 = vmatpush3.xpose.msk.msra.mxu1 %vm307_vm1, %v290_v7 }
  0xf4   : > { %305 = vrot.lane.b32.xlu0 %v849_v6, %s1039_s5 }
 0x162   : > { %v304_v8 = vpop.permute.xlu0 %303 }
 0x163   : > { %854 = vmatprep.mubr.msk.f32.mxu1 %vm307_vm1, %v304_v8 }
 0x166   : > { %v306_v9 = vpop.permute.xlu0 %305 }
 0x167   : > { %855 = vmatmul.mubr.msk.f32.vlgmr.msra.gmra.mxu1 %vm307_vm1, %v306_v9 }
 0x227   : > { %v856_v10 = vpop.f32.mrf.mxu1 }
 0x228   : > { %v388_v15 = vadd.f32 %v856_v10, %v300_v12 }
 0x229   : > { %v382_v13 = vpop.f32.mrf.mxu1 }
 0x22a   : > { %v383_v14 = vadd.f32 %v382_v13, %v299_v11  ;;  %v395_v17 = vsel %vm391_vm2, %v388_v15, -inf }
 0x22c   : > { %v392_v16 = vsel %vm391_vm2, %v383_v14, -inf }
 0x22d   : > { %393 = vmax.xlane.f32.xlu1 %v392_v16 }
 0x231   : > { %396 = vmax.xlane.f32.xlu1 %v395_v17 }
 0x2b6   : > { %v394_v18 = vpop.xlane.xlu1 %393 }
 0x2b7   : > { %v398_v19 = vsub.f32 %v383_v14, %v394_v18 }
 0x2b9   : > { %v400_v20 = vmul.f32 1.442695, %v398_v19 }
 0x2ba   : > { %v397_v21 = vpop.xlane.xlu1 %396 }
 0x2bb   : > { %928 = vpow2.f32 %v400_v20  ;;  %v399_v22 = vsub.f32 %v388_v15, %v397_v21 }
 0x2bd   : > { %v402_v23 = vmul.f32 1.442695, %v399_v22 }
 0x2bf   : > { %930 = vpow2.f32 %v402_v23 }
 0x2c8   : > { %v929_v24 = vpop.eup %928 }
 0x2c9   : > { %v404_v25 = vsel %vm391_vm2, %v929_v24, 0.0 }
 0x2ca   : > { %405 = vadd.xlane.f32.xlu0 %v404_v25 }
 0x2cc   : > { %v931_v26 = vpop.eup %930 }
 0x2cd   : > { %v407_v27 = vsel %vm391_vm2, %v931_v26, 0.0 }
 0x2ce   : > { %408 = vadd.xlane.f32.xlu1 %v407_v27 }
 0x353   : > { %v406_v30 = vpop.xlane.xlu0 %405 }
 0x354   : > { %932 = vrcp.f32 %v406_v30 }
 0x357   : > { %v409_v31 = vpop.xlane.xlu1 %408 }
 0x358   : > { %934 = vrcp.f32 %v409_v31 }
 0x361   : > { %v933_v32 = vpop.eup %932 }
 0x362   : > { %v411_v33 = vmul.f32 %v933_v32, %v929_v24 }
 0x364   : > { %861 = vmatprep.mubr.msk.f32.mxu0 %vm391_vm2, %v411_v33 }
 0x365   : > { %v935_v34 = vpop.eup %934 }
 0x366   : > { %v413_v35 = vmul.f32 %v935_v34, %v931_v26 }
 0x368   : > { %862 = vmatmul.mubr.msk.f32.vlgmr.msra.gmra.mxu0 %vm391_vm2, %v413_v35 }
 0x428   : > { %v863_v36 = vpop.f32.mrf.mxu0 }
 0x429   : > { %v500_v39 = vsel %vm391_vm2, %v863_v36, -inf }
 0x42a   : > { %v488_v37 = vpop.f32.mrf.mxu0 }
 0x42b   : > { %v497_v38 = vsel %vm391_vm2, %v488_v37, -inf }
 0x42c   : > { %498 = vmax.xlane.f32.xlu1 %v497_v38 }
 0x430   : > { %501 = vmax.xlane.f32.xlu1 %v500_v39 }
 0x4b5   : > { %v499_v40 = vpop.xlane.xlu1 %498 }
 0x4b6   : > { %v503_v41 = vsub.f32 %v488_v37, %v499_v40  ;;  %v1050_v40 = vmov 1966171168  }
 0x4b8   : > { %v505_v42 = vmul.f32 1.442695, %v503_v41  ;;  %v696_v41 = vunpack.c.l.s4 %v1050_v40 }
 0x4b9   : > { %v502_v43 = vpop.xlane.xlu1 %501 }
 0x4ba   : > { %936 = vpow2.f32 %v505_v42  ;;  %v504_v44 = vsub.f32 %v863_v36, %v502_v43 }
 0x4bc   : > { %v507_v45 = vmul.f32 1.442695, %v504_v44 }
 0x4be   : > { %938 = vpow2.f32 %v507_v45 }
 0x4c7   : > { %v937_v46 = vpop.eup %936 }
 0x4c8   : > { %v509_v47 = vsel %vm391_vm2, %v937_v46, 0.0 }
 0x4c9   : > { %510 = vadd.xlane.f32.xlu1 %v509_v47 }
 0x4cb   : > { %v939_v48 = vpop.eup %938 }
 0x4cc   : > { %v512_v49 = vsel %vm391_vm2, %v939_v48, 0.0 }
 0x4cd   : > { %513 = vadd.xlane.f32.xlu1 %v512_v49 }
 0x552   : > { %v511_v50 = vpop.xlane.xlu1 %510 }
 0x553   : > { %940 = vrcp.f32 %v511_v50 }
 0x556   : > { %v514_v51 = vpop.xlane.xlu1 %513 }
 0x557   : > { %942 = vrcp.f32 %v514_v51 }
 0x560   : > { %v941_v57 = vpop.eup %940 }
 0x561   : > { %v516_v61 = vmul.f32 %v941_v57, %v937_v46 }
 0x563   : > { %v519_v4 = vcombine.high %v516_v61, %v1042_v3  ;;  %v526_v8 = vrot.slane %v516_v61, %v525_v0 }
 0x564   : > { %v943_v62 = vpop.eup %942 }
 0x565   : > { %v518_v63 = vmul.f32 %v943_v62, %v939_v48  ;;  %v533_v11 = vrot.slane %v519_v4, %v525_v0  ;;  %v541_v15 = vrot.slane %v526_v8, %v540_v1  ;;  %v534_v19 = vcombine.high %v526_v8, %v1042_v3 }
 0x566   : > { %v697_v48 = vunpack.c.0.s8 %v696_v41 }
 0x567   : > { %v575_v2 = vrot.slane %v518_v63, %v525_v0  ;;  %v568_v5 = vcombine.high %v518_v63, %v1042_v3  ;;  %v556_v13 = vrot.slane %v533_v11, %v540_v1  ;;  %v564_v17 = vcombine.high %v541_v15, %v1042_v3 }
 0x568   : > { %v549_v18 = vcombine.high %v533_v11, %v1042_v3  ;;  %v548_v21 = vrot.slane %v534_v19, %v540_v1  ;;  %v700_v58 = vsub.s32 %v697_v48, %v1179_v59 }
 0x569   : > { %v590_v6 = vrot.slane %v575_v2, %v540_v1  ;;  %v583_v7 = vcombine.high %v575_v2, %v1042_v3  ;;  %v582_v12 = vrot.slane %v568_v5, %v525_v0  ;;  %v566_v16 = vcombine.high %v556_v13, %v1042_v3 }
 0x56a   : > { %v563_v20 = vrot.slane %v549_v18, %v540_v1  ;;  %v565_v27 = vcombine.high %v548_v21, %v1042_v3 }
 0x56b   : > { %v613_v9 = vcombine.high %v590_v6, %v1042_v3  ;;  %v597_v10 = vrot.slane %v583_v7, %v540_v1  ;;  %v605_v14 = vrot.slane %v582_v12, %v540_v1  ;;  %v598_v25 = vcombine.high %v582_v12, %v1042_v3 }
 0x56c   : > { %v567_v22 = vcombine.high %v563_v20, %v1042_v3 }
 0x56d   : > { %646 = vrot.lane.b32.xlu0 %v613_v9, %s1043_s10  ;;  %650 = vrot.lane.b32.xlu1 %v597_v10, %s1044_s11  ;;  %v614_v23 = vcombine.high %v597_v10, %v1042_v3  ;;  %v615_v24 = vcombine.high %v605_v14, %v1042_v3  ;;  %v612_v26 = vrot.slane %v598_v25, %v540_v1 }
 0x56f   : > { %v616_v28 = vcombine.high %v612_v26, %v1042_v3 }
 0x571   : > { %630 = vrot.lane.b32.xlu0 %v556_v13, %s1045_s12  ;;  %658 = vrot.lane.b32.xlu1 %v605_v14, %s1045_s12 }
 0x575   : > { %634 = vrot.lane.b32.xlu0 %v566_v16, %s1046_s13  ;;  %618 = vrot.lane.b32.xlu1 %v564_v17, %s1043_s10  ;;  %s974_s10 = sshll.u32 %s1051_s19, 4  ;;  %s975_s10 = int_to_ptr.vmem [resolvable:$false] %s974_s10 }
 0x576   : > { %p977_p11 = scmp.lt.s32.totalorder %s731_s30, %s975_s10 }
 0x579   : > { %638 = vrot.lane.b32.xlu0 %v563_v20, %s1047_s14  ;;  %622 = vrot.lane.b32.xlu1 %v548_v21, %s1044_s11  ;;  %s976_s11 = scalar_lea.vmem %s975_s10, 64 }
 0x57a   : > { %p978_p12 = scmp.lt.s32.totalorder %s976_s11, %s970_s9 }
 0x57c   : > { %p979_p13 = por %p978_p12, %p977_p11 }
 0x57d   : > { %642 = vrot.lane.b32.xlu0 %v567_v22, %s1048_s20  ;;  %654 = vrot.lane.b32.xlu1 %v614_v23, %s1049_s22 }
 0x57e   : > { %p980_p0 = pnand %p979_p13, %p973_p10 }
 0x581   : > { %662 = vrot.lane.b32.xlu1 %v615_v24, %s1046_s13 }
 0x585   : > { %666 = vrot.lane.b32.xlu1 %v612_v26, %s1047_s14 }
 0x589   : > { %626 = vrot.lane.b32.xlu1 %v565_v27, %s1049_s22 }
 0x58d   : > { %670 = vrot.lane.b32.xlu1 %v616_v28, %s1048_s20 }
 0x5df   : > { %v651_v29 = vpop.permute.xlu1 %650  ;;  %v647_v31 = vpop.permute.xlu0 %646 }
 0x5e0   : > { %v685_v38 = vsel %vm391_vm2, %v590_v6, %v647_v31 }
 0x5e1   : > { %v686_v42 = vsel %vm217_vm0, %v685_v38, %v651_v29 }
 0x5e3   : > { %v659_v30 = vpop.permute.xlu1 %658  ;;  %v631_v34 = vpop.permute.xlu0 %630 }
 0x5e7   : > { %v619_v32 = vpop.permute.xlu1 %618  ;;  %v635_v36 = vpop.permute.xlu0 %634 }
 0x5e8   : > { %v673_v44 = vsel %vm391_vm2, %v541_v15, %v619_v32 }
 0x5eb   : > { %v623_v33 = vpop.permute.xlu1 %622  ;;  %v639_v43 = vpop.permute.xlu0 %638 }
 0x5ec   : > { %v674_v46 = vsel %vm217_vm0, %v673_v44, %v623_v33 }
 0x5ef   : > { %v655_v35 = vpop.permute.xlu1 %654  ;;  %v643_v55 = vpop.permute.xlu0 %642 }
 0x5f0   : > { %v687_v45 = vsel %vm675_vm3, %v686_v42, %v655_v35 }
 0x5f1   : > { %v688_v50 = vsel %vm677_vm4, %v687_v45, %v659_v30 }
 0x5f3   : > { %v663_v37 = vpop.permute.xlu1 %662 }
 0x5f4   : > { %v689_v52 = vsel %vm679_vm5, %v688_v50, %v663_v37 }
 0x5f7   : > { %v667_v39 = vpop.permute.xlu1 %666 }
 0x5f8   : > { %v690_v56 = vsel %vm681_vm6, %v689_v52, %v667_v39 }
 0x5fb   : > { %v627_v47 = vpop.permute.xlu1 %626 }
 0x5fc   : > { %v676_v49 = vsel %vm675_vm3, %v674_v46, %v627_v47 }
 0x5fd   : > { %v678_v51 = vsel %vm677_vm4, %v676_v49, %v631_v34 }
 0x5fe   : > { %v680_v53 = vsel %vm679_vm5, %v678_v51, %v635_v36 }
 0x5ff   : > { %v682_v57 = vsel %vm681_vm6, %v680_v53, %v639_v43  ;;  %v671_v60 = vpop.permute.xlu1 %670 }
 0x600   : > { %v684_v61 = vsel %vm683_vm7, %v682_v57, %v643_v55  ;;  %v691_v62 = vsel %vm683_vm7, %v690_v56, %v671_v60 }
 0x601   : > { %v694_v63 = vcombine.low %v684_v61, %v691_v62 }
 0x603   : > { %v701_v0 = vrot.slane %v694_v63, %v700_v58 }
 0x605   : > { %v708_v1 = vrot.slane %v701_v0, %v700_v58 }
 0x607   : > { %714 = vst.msk [vmem:[%s205_s29] sm:$0x3] %vm712_vm8, %v708_v1 }
 0x608   : > { %983 = shalt.err (!%p980_p0)
}
 0x609   : > { %s984_s12 = scalar_lea.hbm %s728_s7, 32  ;;  %s988_s20 = scalar_lea.hbm %s1231_s4, 64 }
 0x60a   : > { %p985_p1 = scmp.ne.s32.totalorder %s728_s7, %s984_s12  ;;  %p989_p4 = scmp.lt.s32.totalorder %s728_s7, %s1231_s4 }
 0x60b   : > { %p990_p7 = scmp.lt.s32.totalorder %s988_s20, %s984_s12 }
 0x60c   : > { %p986_p2 = pnand %p985_p1, %p1115_p5 }
 0x60d   : > { %p991_p8 = por %p990_p7, %p989_p4 }
 0x60e   : > { %p987_p3 = pneg %p986_p2 }
 0x610   : > { %p992_p6 = pnand %p991_p8, %p987_p3 }
 0x612   : > { %995 = shalt.err (!%p992_p6)
}
 0x613   : > { %868 = dma.vmem_to_hbm [thread:$0]  (%p1115_p5), %s731_s30, 32, %s728_s7, %s716_s8  }
 0x614 PF: > { %p880_p9 = scmp.ge.s32.totalorder %s1034_s18, 2  ;;  %s742_s27 = sand.u32 1, %s1022_s15  }
 0x615   : > { %p1235_p10 = scmp.ne.s32.totalorder %s1233_s26, 0  ;;  %s743_s28 = scalar_lea.sflag [#allocation4], %s742_s27 }
 0x617   : > { %p875_p11 = pnand %p880_p9, %p1235_p10 }
 0x619   : > { %p876_p12 = pneg %p875_p11 }
 0x61b   : > { %1017 = dma.done.wait (%p876_p12), %s743_s28, 32  }
 0x61c   : > { %1019 = vsyncadd (%p876_p12), %s743_s28, 4294967264  ;;  %p15_p13 = scmp.ge.s32.totalorder %s1102_s21, 4   ;;  %s1236_s15 = smov %s1026_s16 }
 0x61d   : > { %s1237_s16 = smov %s1030_s17  ;;  %s1238_s17 = smov %s1113_s24 }
 0x61e   : > { %s1239_s18 = smov %s1102_s21  ;;  %17 = sbr.rel (!%p15_p13) target bundleno = 4 (0x4), region = 76 }
 0x623   :  { %748 = vsyncpa [#allocation3], 1 }
 0x624   :  { %750 = vsyncpa [#allocation3 + $0x1], 1 }
 0x625   :  { %751 = vsyncpa [#allocation4], 1 }
 0x626   :  { %753 = vsyncpa [#allocation4 + $0x1], 1 }

</bundles_post_ra>
